<compile_context>
chip_gen: v7x
topology: tpu7x:2x2x1
jax: 0.10.0
libtpu: 0.0.40
codegen_flags: <defaults>
</compile_context>

<pallas_src>
import math

import jax
import jax.numpy as jnp
from jax.experimental import pallas as pl
from jax.experimental.pallas import tpu as pltpu

_LANE = 128      # vreg lane width: last-dim padding target
_SUBLANE = 8     # f32 sublane width: batch-tile granularity


def _round_up(x, m):
    return ((x + m - 1) // m) * m


# ----------------------------- fused kernel -----------------------------

def _make_fused_kernel(n_layers, out_valid):
    """Builds kernel(x_ref, w0, b0, w1, b1, ..., o_ref) for n_layers layers.

    Each layer: h = ReLU6(h @ W + b); final: masked log_softmax over lanes.
    Layers are unrolled at trace time; intermediates live in vregs/VMEM.
    """

    def kernel(x_ref, *refs):
        o_ref = refs[-1]
        param_refs = refs[:-1]

        h = x_ref[...].astype(jnp.float32)
        for li in range(n_layers):
            w = param_refs[2 * li][...].astype(jnp.float32)
            b = param_refs[2 * li + 1][...].astype(jnp.float32)   # (1, Dout_pad)
            h = jnp.dot(h, w, preferred_element_type=jnp.float32) + b
            h = jnp.minimum(jnp.maximum(h, 0.0), 6.0)             # ReLU6 (every layer)

        # Numerically-stable log_softmax over dim=1, excluding the padded lanes.
        col = jax.lax.broadcasted_iota(jnp.int32, h.shape, 1)
        valid = col < out_valid
        neg = jnp.float32(-1e30)
        hm = jnp.where(valid, h, neg)
        m = jnp.max(hm, axis=1, keepdims=True)
        y = hm - m
        lse = jnp.log(jnp.sum(jnp.where(valid, jnp.exp(y), 0.0),
                              axis=1, keepdims=True))
        o_ref[...] = (y - lse).astype(o_ref.dtype)

    return kernel


# ------------------------------ wrapper ------------------------------

def fused_mlp_log_softmax(x, weights, biases, out_valid):
    """x: [B, Din_pad-compatible], weights[i]: [Din_pad_i, Dout_pad_i] (zero padded),
    biases[i]: [1, Dout_pad_i]. Returns log_softmax output [B, out_valid]."""
    B, Din = x.shape
    Din_pad = weights[0].shape[0]
    Dout_pad = weights[-1].shape[1]
    n_layers = len(weights)

    # Batch tiling: multiple of 8 sublanes, capped at 256 rows per grid step.
    tm = min(256, _round_up(B, _SUBLANE))
    B_pad = _round_up(B, tm)

    # Zero-pad input rows (extra batch rows) and feature lanes.
    x_p = jnp.zeros((B_pad, Din_pad), x.dtype).at[:B, :Din].set(x)

    kernel = _make_fused_kernel(n_layers, out_valid)

    in_specs = [pl.BlockSpec((tm, Din_pad), lambda i: (i, 0))]
    params_flat = []
    for w, b in zip(weights, biases):
        in_specs.append(pl.BlockSpec(w.shape, lambda i: (0, 0)))  # VMEM-resident
        in_specs.append(pl.BlockSpec(b.shape, lambda i: (0, 0)))
        params_flat += [w, b]

    flops = sum(2 * B_pad * w.shape[0] * w.shape[1] for w in weights)
    param_bytes = sum(w.size * 4 + b.size * 4 for w, b in zip(weights, biases))
    cost = pl.CostEstimate(
        flops=flops,
        transcendentals=B_pad * Dout_pad + B_pad,            # exp + log
        bytes_accessed=x_p.size * 4 + param_bytes + B_pad * Dout_pad * 4,
    )

    out_p = pl.pallas_call(
        kernel,
        out_shape=jax.ShapeDtypeStruct((B_pad, Dout_pad), x.dtype),
        grid=(B_pad // tm,),
        in_specs=in_specs,
        out_specs=pl.BlockSpec((tm, Dout_pad), lambda i: (i, 0)),
        compiler_params=pltpu.CompilerParams(
            dimension_semantics=("parallel",),        # megacore-shard batch axis
            vmem_limit_bytes=32 * 1024 * 1024,        # explicit, safe on v7x's 64 MiB
        ),
        cost_estimate=cost,
    )(x_p, *params_flat)

    return out_p[:B, :out_valid]


# --------------------------- module-equivalent ---------------------------

class FullyConnected:
    """JAX/Pallas port of the PyTorch FullyConnected module.

    nodes_per_layer[0] is the input width; each subsequent entry is a Linear
    layer's output width. The nonlinearity is ReLU6 (PyTorch default), applied
    after every layer, followed by log_softmax over dim=1 — all fused into a
    single Pallas kernel. Weights are stored as [in, out] (transpose of
    PyTorch's [out, in]) zero-padded to multiples of 128 in both feature dims.
    """

    def __init__(self, nodes_per_layer, key):
        self.widths = list(nodes_per_layer)
        padded = [_round_up(w, _LANE) for w in nodes_per_layer]
        self.weights = []
        self.biases = []
        for ii in range(1, len(nodes_per_layer)):
            fan_in, fan_out = nodes_per_layer[ii - 1], nodes_per_layer[ii]
            fi_p, fo_p = padded[ii - 1], padded[ii]
            key, kw, kb = jax.random.split(key, 3)
            bound = 1.0 / math.sqrt(fan_in)
            # Mirrors nn.Linear's U(-1/sqrt(fan_in), 1/sqrt(fan_in)) init.
            w = jax.random.uniform(kw, (fan_in, fan_out), jnp.float32,
                                   minval=-bound, maxval=bound)
            b = jax.random.uniform(kb, (fan_out,), jnp.float32,
                                   minval=-bound, maxval=bound)
            # Zero padding keeps padded lanes at exactly 0 through every layer
            # (0-weights, 0-bias, ReLU6(0)=0), so only the final log_softmax
            # needs masking.
            w_p = jnp.zeros((fi_p, fo_p), jnp.float32).at[:fan_in, :fan_out].set(w)
            b_p = jnp.zeros((1, fo_p), jnp.float32).at[0, :fan_out].set(b)
            self.weights.append(w_p)
            self.biases.append(b_p)

    def __call__(self, x):
        return fused_mlp_log_softmax(x, self.weights, self.biases,
                                     out_valid=self.widths[-1])


# --------------------------------- main ---------------------------------

if __name__ == "__main__":
    key = jax.random.PRNGKey(0)
    k_in, k_model = jax.random.split(key)

    batch = 8
    nodes_per_layer = [32, 64, 16]   # input width 32, two Linear layers

    x = jax.random.normal(k_in, (batch, nodes_per_layer[0]), jnp.float32)
    model = FullyConnected(nodes_per_layer, k_model)

    out = model(x)
    out = jax.block_until_ready(out)

    # Sanity: correct shape and each row of log_softmax output exp-sums to ~1.
    assert out.shape == (batch, nodes_per_layer[-1])
    row_sums = jnp.sum(jnp.exp(out), axis=1)
    assert bool(jnp.all(jnp.abs(row_sums - 1.0) < 1e-4))
    assert bool(jnp.all(jnp.isfinite(out)))

    print("KERNEL_OK")
</pallas_src>

<mosaic_0001>
module attributes {stable_mosaic.version = 11 : i64} {
  func.func @kernel(%arg0: i32, %arg1: memref<8x128xf32, #tpu.memory_space<vmem>>, %arg2: memref<128x128xf32, #tpu.memory_space<vmem>>, %arg3: memref<1x128xf32, #tpu.memory_space<vmem>>, %arg4: memref<128x128xf32, #tpu.memory_space<vmem>>, %arg5: memref<1x128xf32, #tpu.memory_space<vmem>>, %arg6: memref<8x128xf32, #tpu.memory_space<vmem>>) attributes {dimension_semantics = [#tpu.dimension_semantics<parallel>], iteration_bounds = array<i64: 1>, scalar_prefetch = 0 : i64, scratch_operands = 0 : i64, tpu.core_type = #tpu.core_type<tc>, window_params = [{transform_indices = @transform_0, window_bounds = array<i64: 8, 128>}, {pipeline_mode = #tpu.pipeline_mode<synchronous>, transform_indices = @transform_1, window_bounds = array<i64: 128, 128>}, {pipeline_mode = #tpu.pipeline_mode<synchronous>, transform_indices = @transform_2, window_bounds = array<i64: 1, 128>}, {pipeline_mode = #tpu.pipeline_mode<synchronous>, transform_indices = @transform_3, window_bounds = array<i64: 128, 128>}, {pipeline_mode = #tpu.pipeline_mode<synchronous>, transform_indices = @transform_4, window_bounds = array<i64: 1, 128>}, {transform_indices = @transform_5, window_bounds = array<i64: 8, 128>}]} {
    %c0 = arith.constant 0 : index
    %c0_0 = arith.constant 0 : index
    %0 = vector.load %arg1[%c0, %c0_0] : memref<8x128xf32, #tpu.memory_space<vmem>>, vector<8x128xf32>
    %c0_1 = arith.constant 0 : index
    %c0_2 = arith.constant 0 : index
    %1 = vector.load %arg2[%c0_1, %c0_2] : memref<128x128xf32, #tpu.memory_space<vmem>>, vector<128x128xf32>
    %c0_3 = arith.constant 0 : index
    %c0_4 = arith.constant 0 : index
    %2 = vector.load %arg3[%c0_3, %c0_4] : memref<1x128xf32, #tpu.memory_space<vmem>>, vector<1x128xf32>
    %cst = arith.constant dense<0.000000e+00> : vector<8x128xf32>
    %3 = tpu.matmul %0, %1, %cst {dimension_numbers = #tpu.dot_dimension_numbers<[1], [0], [0], [1], [0, 0, 1, 1], [], []>} : vector<8x128xf32>, vector<128x128xf32>, vector<8x128xf32> -> vector<8x128xf32>
    %4 = vector.broadcast %2 : vector<1x128xf32> to vector<8x128xf32>
    %5 = arith.addf %3, %4 : vector<8x128xf32>
    %cst_5 = arith.constant 0.000000e+00 : f32
    %6 = vector.broadcast %cst_5 : f32 to vector<8x128xf32>
    %7 = arith.maximumf %5, %6 : vector<8x128xf32>
    %cst_6 = arith.constant 6.000000e+00 : f32
    %8 = vector.broadcast %cst_6 : f32 to vector<8x128xf32>
    %9 = arith.minimumf %7, %8 : vector<8x128xf32>
    %c0_7 = arith.constant 0 : index
    %c0_8 = arith.constant 0 : index
    %10 = vector.load %arg4[%c0_7, %c0_8] : memref<128x128xf32, #tpu.memory_space<vmem>>, vector<128x128xf32>
    %c0_9 = arith.constant 0 : index
    %c0_10 = arith.constant 0 : index
    %11 = vector.load %arg5[%c0_9, %c0_10] : memref<1x128xf32, #tpu.memory_space<vmem>>, vector<1x128xf32>
    %cst_11 = arith.constant dense<0.000000e+00> : vector<8x128xf32>
    %12 = tpu.matmul %9, %10, %cst_11 {dimension_numbers = #tpu.dot_dimension_numbers<[1], [0], [0], [1], [0, 0, 1, 1], [], []>} : vector<8x128xf32>, vector<128x128xf32>, vector<8x128xf32> -> vector<8x128xf32>
    %13 = vector.broadcast %11 : vector<1x128xf32> to vector<8x128xf32>
    %14 = arith.addf %12, %13 : vector<8x128xf32>
    %cst_12 = arith.constant 0.000000e+00 : f32
    %15 = vector.broadcast %cst_12 : f32 to vector<8x128xf32>
    %16 = arith.maximumf %14, %15 : vector<8x128xf32>
    %cst_13 = arith.constant 6.000000e+00 : f32
    %17 = vector.broadcast %cst_13 : f32 to vector<8x128xf32>
    %18 = arith.minimumf %16, %17 : vector<8x128xf32>
    %19 = tpu.iota {dimensions = array<i32: 1>} : vector<8x128xi32>
    %c16_i32 = arith.constant 16 : i32
    %20 = vector.broadcast %c16_i32 : i32 to vector<8x128xi32>
    %21 = arith.cmpi slt, %19, %20 : vector<8x128xi32>
    %cst_14 = arith.constant -1.000000e+30 : f32
    %22 = vector.broadcast %cst_14 : f32 to vector<8x128xf32>
    %23 = arith.select %21, %18, %22 : vector<8x128xi1>, vector<8x128xf32>
    %cst_15 = arith.constant dense<0xFF800000> : vector<8xf32>
    %24 = vector.multi_reduction <maximumf>, %23, %cst_15 [1] : vector<8x128xf32> to vector<8xf32>
    %25 = vector.shape_cast %24 : vector<8xf32> to vector<8x1xf32>
    %26 = vector.broadcast %25 : vector<8x1xf32> to vector<8x128xf32>
    %27 = arith.subf %23, %26 : vector<8x128xf32>
    %28 = math.exp %27 : vector<8x128xf32>
    %cst_16 = arith.constant 0.000000e+00 : f32
    %29 = vector.broadcast %cst_16 : f32 to vector<8x128xf32>
    %30 = arith.select %21, %28, %29 : vector<8x128xi1>, vector<8x128xf32>
    %cst_17 = arith.constant dense<0.000000e+00> : vector<8xf32>
    %31 = vector.multi_reduction <add>, %30, %cst_17 [1] : vector<8x128xf32> to vector<8xf32>
    %32 = vector.shape_cast %31 : vector<8xf32> to vector<8x1xf32>
    %33 = math.log %32 : vector<8x1xf32>
    %34 = vector.broadcast %33 : vector<8x1xf32> to vector<8x128xf32>
    %35 = arith.subf %27, %34 : vector<8x128xf32>
    %c0_18 = arith.constant 0 : index
    %c0_19 = arith.constant 0 : index
    %36 = vector.load %arg6[%c0_18, %c0_19] : memref<8x128xf32, #tpu.memory_space<vmem>>, vector<8x128xf32>
    tpu.vector_store %arg6[%c0_18, %c0_19], %35 {strides = array<i32>} : memref<8x128xf32, #tpu.memory_space<vmem>>, vector<8x128xf32>,
    return
  }
  func.func @transform_0(%arg0: i32) -> (i32, i32) {
    %c0_i32 = arith.constant 0 : i32
    %c0_i32_0 = arith.constant 0 : i32
    return %arg0, %c0_i32 : i32, i32
  }
  func.func @transform_1(%arg0: i32) -> (i32, i32) {
    %c0_i32 = arith.constant 0 : i32
    %c0_i32_0 = arith.constant 0 : i32
    %c0_i32_1 = arith.constant 0 : i32
    return %c0_i32, %c0_i32_0 : i32, i32
  }
  func.func @transform_2(%arg0: i32) -> (i32, i32) {
    %c0_i32 = arith.constant 0 : i32
    %c0_i32_0 = arith.constant 0 : i32
    %c0_i32_1 = arith.constant 0 : i32
    return %c0_i32, %c0_i32_0 : i32, i32
  }
  func.func @transform_3(%arg0: i32) -> (i32, i32) {
    %c0_i32 = arith.constant 0 : i32
    %c0_i32_0 = arith.constant 0 : i32
    %c0_i32_1 = arith.constant 0 : i32
    return %c0_i32, %c0_i32_0 : i32, i32
  }
  func.func @transform_4(%arg0: i32) -> (i32, i32) {
    %c0_i32 = arith.constant 0 : i32
    %c0_i32_0 = arith.constant 0 : i32
    %c0_i32_1 = arith.constant 0 : i32
    return %c0_i32, %c0_i32_0 : i32, i32
  }
  func.func @transform_5(%arg0: i32) -> (i32, i32) {
    %c0_i32 = arith.constant 0 : i32
    %c0_i32_0 = arith.constant 0 : i32
    return %arg0, %c0_i32 : i32, i32
  }
}

</mosaic_0001>

<bundles_post_ra>
// kernel: tpu_custom_call.1
= control target key start
LH: loop header
LB: loop body
LE: loop exit
PB: predicated region body
PF: predicated region fallthrough
CT: control target
= control target key end

     0   :  { %10 = vsyncpa [#allocation3], 0  ;;  %s659_s0 = inlined_call_operand.hbm [shape: f32[8,128], index: 0, kind: input, shape index: {}]   ;;  %s660_s1 = inlined_call_operand.hbm [shape: f32[128,128], index: 1, kind: input, shape index: {}]   ;;  %s661_s2 = inlined_call_operand.vmem [shape: f32[1,128], index: 2, kind: input, shape index: {}]   ;;  %s662_s3 = inlined_call_operand.hbm [shape: f32[128,128], index: 3, kind: input, shape index: {}]   ;;  %s663_s4 = inlined_call_operand.vmem [shape: f32[1,128], index: 4, kind: input, shape index: {}]   ;;  %s664_s5 = inlined_call_operand.hbm [shape: f32[8,128], index: 5, kind: output, shape index: {}]  }
   0x1   :  { %11 = vsyncpa [#allocation6], 0 }
   0x2   :  { %12 = vsyncpa [#allocation4], 0  ;;  %s544_s18 = smov [#allocation5]   ;;  %s450_s22 = scalar_lea.hbm %s660_s1, 2048 }
   0x3   :  { %s28_s19 = sshll.u32 %s544_s18, 4  ;;  %p451_p0 = scmp.ne.s32.totalorder %s660_s1, %s450_s22  ;;  %s29_s19 = int_to_ptr.vmem [resolvable:$true] %s28_s19 }
   0x4   :  { %p454_p1 = scmp.lt.u32.totalorder %s450_s22, %s660_s1 }
   0x6   :  { %p456_p2 = pnand %p454_p1, %p451_p0 }
   0x8   :  { %459 = shalt.err (!%p456_p2)
}
   0x9   :  { %s460_s27 = scalar_lea.vmem %s29_s19, 2048  ;;  %p465_p4 = scmp.lt.s32.totalorder %s29_s19, %s29_s19 }
   0xa   :  { %p461_p3 = scmp.ne.s32.totalorder %s29_s19, %s460_s27  ;;  %p466_p5 = scmp.lt.s32.totalorder %s460_s27, %s460_s27 }
   0xc   :  { %p467_p6 = por %p466_p5, %p465_p4 }
   0xe   :  { %p468_p7 = pnand %p467_p6, %p461_p3 }
  0x10   :  { %471 = shalt.err (!%p468_p7)
}
  0x11   :  { %s545_s28 = smov 128   ;;  %s546_s29 = smov 8  }
  0x12   :  { %34 = dma.hbm_to_vmem [thread:$0]  %s660_s1, 2048, %s29_s19, [#allocation6], %s545_s28, %s545_s28, %s546_s29  }
  0x13   :  { %s547_s7 = smov [#allocation2]   ;;  %s548_s9 = smov [#allocation7]  }
  0x14   :  { %s19_s8 = sshll.u32 %s547_s7, 4  ;;  %s42_s10 = sshll.u32 %s548_s9, 4  ;;  %s20_s8 = int_to_ptr.vmem [resolvable:$true] %s19_s8  ;;  %s43_s10 = int_to_ptr.vmem [resolvable:$true] %s42_s10 }
  0x15   :  { %s472_s13 = scalar_lea.hbm %s659_s0, 128 }
  0x16   :  { %p473_p8 = scmp.ne.s32.totalorder %s659_s0, %s472_s13  ;;  %p476_p9 = scmp.lt.u32.totalorder %s472_s13, %s659_s0 }
  0x18   :  { %p478_p10 = pnand %p476_p9, %p473_p8 }
  0x1a   :  { %481 = shalt.err (!%p478_p10)
}
  0x1b   :  { %s482_s1 = scalar_lea.vmem %s20_s8, 128  ;;  %p487_p12 = scmp.lt.s32.totalorder %s20_s8, %s20_s8 }
  0x1c   :  { %p483_p11 = scmp.ne.s32.totalorder %s20_s8, %s482_s1  ;;  %p488_p13 = scmp.lt.s32.totalorder %s482_s1, %s482_s1 }
  0x1e   :  { %p489_p0 = por %p488_p13, %p487_p12 }
  0x20   :  { %p490_p1 = pnand %p489_p0, %p483_p11 }
  0x22   :  { %493 = shalt.err (!%p490_p1)
}
  0x23   :  { %22 = dma.hbm_to_vmem [thread:$0]  %s659_s0, 128, %s20_s8, [#allocation3]  }
  0x24   :  { %s494_s22 = scalar_lea.hbm %s662_s3, 2048 }
  0x25   :  { %p495_p2 = scmp.ne.s32.totalorder %s662_s3, %s494_s22  ;;  %p498_p3 = scmp.lt.u32.totalorder %s494_s22, %s662_s3 }
  0x27   :  { %p500_p4 = pnand %p498_p3, %p495_p2 }
  0x29   :  { %503 = shalt.err (!%p500_p4)
}
  0x2a   :  { %s504_s27 = scalar_lea.vmem %s43_s10, 2048  ;;  %p509_p6 = scmp.lt.s32.totalorder %s43_s10, %s43_s10 }
  0x2b   :  { %p505_p5 = scmp.ne.s32.totalorder %s43_s10, %s504_s27  ;;  %p510_p7 = scmp.lt.s32.totalorder %s504_s27, %s504_s27 }
  0x2d   :  { %p511_p8 = por %p510_p7, %p509_p6 }
  0x2f   :  { %p512_p9 = pnand %p511_p8, %p505_p5 }
  0x31   :  { %515 = shalt.err (!%p512_p9)
}
  0x32   :  { %48 = dma.hbm_to_vmem [thread:$0]  %s662_s3, 2048, %s43_s10, [#allocation6], %s545_s28, %s545_s28, %s546_s29  }
  0x33   :  { %538 = dma.done.wait [#allocation3], 128  }
  0x34   :  { %539 = vsyncadd [#allocation3], 4294967168 }
  0x35   :  { %540 = dma.done.wait [#allocation6], 4096  }
  0x36   :  { %541 = vsyncadd [#allocation6], 4294963200  ;;  %v549_v0 = vmov 0.0|0.0   ;;  %vm550_vm0 = vmmov 0   ;;  %v551_v1 = vmov 0.0   ;;  %v61_v2 = vld [vmem:[#allocation5] sm:$0xff]  ;;  %v251_v57 = vlaneseq }
  0x37   :  { %389 = vmatprep.subr.bf16.mxu0 %v549_v0  ;;  %351 = vmatprep.mubr.msk.f32.mxu0 %vm550_vm0, %v551_v1  ;;  %v62_v3 = vld [vmem:[#allocation5 + $0x8] sm:$0xff]  ;;  %v63_v4 = vld [vmem:[#allocation5 + $0x10] sm:$0xff]  ;;  %v64_v6 = vld [vmem:[#allocation5 + $0x18] sm:$0xff] }
  0x38   :  { %413 = vmatprep.subr.bf16.mxu1 %v549_v0  ;;  %386 = vmatprep.mubr.msk.f32.mxu1 %vm550_vm0, %v551_v1  ;;  %v390_v5 = vpack.c.bf16 %v62_v3, %v61_v2  ;;  %v393_v7 = vpack.c.bf16 %v64_v6, %v63_v4  ;;  %v65_v8 = vld [vmem:[#allocation5 + $0x20] sm:$0xff]  ;;  %v66_v9 = vld [vmem:[#allocation5 + $0x28] sm:$0xff]  ;;  %v158_v12 = vld [vmem:[#allocation7 + $0x10] sm:$0xff]  ;;  %v252_v60 = vand.u32 127, %v251_v57 }
  0x39   :  { %v156_v10 = vld [vmem:[#allocation7] sm:$0xff]  ;;  %v157_v11 = vld [vmem:[#allocation7 + $0x8] sm:$0xff]  ;;  %v159_v13 = vld [vmem:[#allocation7 + $0x18] sm:$0xff]  ;;  %v396_v14 = vpack.c.bf16 %v66_v9, %v65_v8 }
  0x3a   :  { %391 = vmatpush3.bf16.msra.mxu0 %v390_v5  ;;  %v414_v15 = vpack.c.bf16 %v157_v11, %v156_v10  ;;  %v67_v16 = vld [vmem:[#allocation5 + $0x30] sm:$0xff]  ;;  %v68_v17 = vld [vmem:[#allocation5 + $0x38] sm:$0xff]  ;;  %v417_v18 = vpack.c.bf16 %v159_v13, %v158_v12  ;;  %v160_v19 = vld [vmem:[#allocation7 + $0x20] sm:$0xff]  ;;  %vm253_vm1 = vcmp.lt.s32.totalorder %v252_v60, 16 }
  0x3b   :  { %392 = vmatprep.subr.bf16.mxu0 %v549_v0  ;;  %v161_v20 = vld [vmem:[#allocation7 + $0x28] sm:$0xff]  ;;  %v399_v21 = vpack.c.bf16 %v68_v17, %v67_v16  ;;  %v69_v22 = vld [vmem:[#allocation5 + $0x40] sm:$0xff]  ;;  %v162_v25 = vld [vmem:[#allocation7 + $0x30] sm:$0xff] }
  0x3c   :  { %415 = vmatpush3.bf16.msra.mxu1 %v414_v15  ;;  %v70_v23 = vld [vmem:[#allocation5 + $0x48] sm:$0xff]  ;;  %v420_v24 = vpack.c.bf16 %v161_v20, %v160_v19  ;;  %v163_v26 = vld [vmem:[#allocation7 + $0x38] sm:$0xff]  ;;  %v71_v28 = vld [vmem:[#allocation5 + $0x50] sm:$0xff] }
  0x3d   :  { %416 = vmatprep.subr.bf16.mxu1 %v549_v0  ;;  %v402_v27 = vpack.c.bf16 %v70_v23, %v69_v22  ;;  %v72_v29 = vld [vmem:[#allocation5 + $0x58] sm:$0xff]  ;;  %v423_v30 = vpack.c.bf16 %v163_v26, %v162_v25  ;;  %v164_v31 = vld [vmem:[#allocation7 + $0x40] sm:$0xff]  ;;  %v165_v32 = vld [vmem:[#allocation7 + $0x48] sm:$0xff] }
  0x3e   :  { %394 = vmatpush3.bf16.msra.mxu0 %v393_v7  ;;  %v405_v33 = vpack.c.bf16 %v72_v29, %v71_v28  ;;  %v73_v34 = vld [vmem:[#allocation5 + $0x60] sm:$0xff]  ;;  %v74_v35 = vld [vmem:[#allocation5 + $0x68] sm:$0xff]  ;;  %v426_v36 = vpack.c.bf16 %v165_v32, %v164_v31  ;;  %v166_v37 = vld [vmem:[#allocation7 + $0x50] sm:$0xff] }
  0x3f   :  { %395 = vmatprep.subr.bf16.mxu0 %v549_v0  ;;  %v167_v38 = vld [vmem:[#allocation7 + $0x58] sm:$0xff]  ;;  %v408_v39 = vpack.c.bf16 %v74_v35, %v73_v34  ;;  %v75_v40 = vld [vmem:[#allocation5 + $0x70] sm:$0xff]  ;;  %v168_v45 = vld [vmem:[#allocation7 + $0x60] sm:$0xff] }
  0x40   :  { %418 = vmatpush3.bf16.msra.mxu1 %v417_v18  ;;  %v76_v41 = vld [vmem:[#allocation5 + $0x78] sm:$0xff]  ;;  %v429_v42 = vpack.c.bf16 %v167_v38, %v166_v37  ;;  %v169_v46 = vld [vmem:[#allocation7 + $0x68] sm:$0xff]  ;;  %v170_v48 = vld [vmem:[#allocation7 + $0x70] sm:$0xff] }
  0x41   :  { %419 = vmatprep.subr.bf16.mxu1 %v549_v0  ;;  %v411_v43 = vpack.c.bf16 %v76_v41, %v75_v40  ;;  %v60_v44 = vld [vmem:[#allocation2] sm:$0xff]  ;;  %v432_v47 = vpack.c.bf16 %v169_v46, %v168_v45 }
  0x42   :  { %397 = vmatpush3.bf16.msra.mxu0 %v396_v14  ;;  %v171_v49 = vld [vmem:[#allocation7 + $0x78] sm:$0xff] }
  0x43   :  { %398 = vmatprep.subr.bf16.mxu0 %v549_v0  ;;  %v435_v50 = vpack.c.bf16 %v171_v49, %v170_v48  ;;  %v283_v51 = vld [vmem:[%s661_s2] ss:$0 sm:$0xff]  ;;  %s552_s2 = smov [#allocation8]  }
  0x44   :  { %421 = vmatpush3.bf16.msra.mxu1 %v420_v24  ;;  %v284_v58 = vld [vmem:[%s663_s4] ss:$0 sm:$0xff]  ;;  %s273_s4 = sshll.u32 %s552_s2, 4  ;;  %s274_s4 = int_to_ptr.vmem [resolvable:$true] %s273_s4 }
  0x45   :  { %422 = vmatprep.subr.bf16.mxu1 %v549_v0  ;;  %s516_s7 = scalar_lea.vmem %s274_s4, 128  ;;  %p521_p11 = scmp.lt.s32.totalorder %s274_s4, %s274_s4 }
  0x46   :  { %400 = vmatpush3.bf16.msra.mxu0 %v399_v21  ;;  %p517_p10 = scmp.ne.s32.totalorder %s274_s4, %s516_s7  ;;  %p522_p12 = scmp.lt.s32.totalorder %s516_s7, %s516_s7 }
  0x47   :  { %401 = vmatprep.subr.bf16.mxu0 %v549_v0 }
  0x48   :  { %424 = vmatpush3.bf16.msra.mxu1 %v423_v30  ;;  %p523_p13 = por %p522_p12, %p521_p11 }
  0x49   :  { %425 = vmatprep.subr.bf16.mxu1 %v549_v0 }
  0x4a   :  { %403 = vmatpush3.bf16.msra.mxu0 %v402_v27  ;;  %p524_p0 = pnand %p523_p13, %p517_p10 }
  0x4b   :  { %404 = vmatprep.subr.bf16.mxu0 %v549_v0 }
  0x4c   :  { %427 = vmatpush3.bf16.msra.mxu1 %v426_v36 }
  0x4d   :  { %428 = vmatprep.subr.bf16.mxu1 %v549_v0 }
  0x4e   :  { %406 = vmatpush3.bf16.msra.mxu0 %v405_v33 }
  0x4f   :  { %407 = vmatprep.subr.bf16.mxu0 %v549_v0 }
  0x50   :  { %430 = vmatpush3.bf16.msra.mxu1 %v429_v42 }
  0x51   :  { %431 = vmatprep.subr.bf16.mxu1 %v549_v0 }
  0x52   :  { %409 = vmatpush3.bf16.msra.mxu0 %v408_v39 }
  0x53   :  { %410 = vmatprep.subr.bf16.mxu0 %v549_v0 }
  0x54   :  { %433 = vmatpush3.bf16.msra.mxu1 %v432_v47 }
  0x55   :  { %434 = vmatprep.subr.bf16.mxu1 %v549_v0 }
  0x56   :  { %412 = vmatpush3.bf16.msra.mxu0 %v411_v43 }
  0x58   :  { %436 = vmatpush3.bf16.msra.mxu1 %v435_v50 }
  0x59   :  { %352 = vmatmul.mubr.f32.vlgmr.msra.gmra.mrb[0].mxu0 %v60_v44 }
 0x12c   :  { %v150_v52 = vpop.f32.mrb[0].mxu0 }
 0x12d   :  { %v151_v53 = vadd.f32 %v283_v51, %v150_v52  ;;  %v353_v54 = vpop.f32.mrb[1].mxu0 }
 0x12f   :  { %v154_v55 = vmax.f32 %v151_v53, 0.0 }
 0x131   :  { %v155_v56 = vmin.f32 %v154_v55, 6.0 }
 0x133   :  { %387 = vmatmul.mubr.f32.vlgmr.msra.gmra.mrb[0].mxu1 %v155_v56 }
 0x206   :  { %v245_v59 = vpop.f32.mrb[0].mxu1 }
 0x207   :  { %v246_v61 = vadd.f32 %v284_v58, %v245_v59  ;;  %v388_v62 = vpop.f32.mrb[1].mxu1 }
 0x209   :  { %v249_v63 = vmax.f32 %v246_v61, 0.0 }
 0x20b   :  { %v250_v0 = vmin.f32 %v249_v63, 6.0 }
 0x20d   :  { %v254_v1 = vsel %vm253_vm1, %v250_v0, -1e+30 }
 0x20e   :  { %255 = vmax.xlane.f32.xlu0 %v254_v1 }
 0x29b   :  { %v256_v2 = vpop.xlane.xlu0 %255 }
 0x29c   :  { %v257_v3 = vsub.f32 %v254_v1, %v256_v2 }
 0x29e   :  { %v258_v4 = vmul.f32 1.442695, %v257_v3 }
 0x2a0   :  { %446 = vpow2.f32 %v258_v4 }
 0x2aa   :  { %v447_v5 = vpop.eup %446 }
 0x2ab   :  { %v260_v6 = vsel %vm253_vm1, %v447_v5, 0.0 }
 0x2ac   :  { %261 = vadd.xlane.f32.xlu0 %v260_v6 }
 0x339   :  { %v262_v7 = vpop.xlane.xlu0 %261 }
 0x33a   :  { %448 = vlog2.f32 %v262_v7 }
 0x344   :  { %v449_v8 = vpop.eup %448 }
 0x345   :  { %v264_v9 = vmul.f32 0.6931472, %v449_v8 }
 0x347   :  { %v265_v10 = vsub.f32 %v257_v3, %v264_v9 }
 0x349   :  { %266 = vst [vmem:[#allocation8] sm:$0xff] %v265_v10 }
 0x34a   :  { %527 = shalt.err (!%p524_p0)
}
 0x34b   :  { %s528_s10 = scalar_lea.hbm %s664_s5, 128 }
 0x34c   :  { %p529_p1 = scmp.ne.s32.totalorder %s664_s5, %s528_s10  ;;  %p532_p2 = scmp.lt.u32.totalorder %s528_s10, %s664_s5 }
 0x34e   :  { %p534_p3 = pnand %p532_p2, %p529_p1 }
 0x350   :  { %537 = shalt.err (!%p534_p3)
}
 0x351   :  { %276 = dma.vmem_to_hbm [thread:$0]  %s274_s4, 128, %s664_s5, [#allocation4]  }
 0x352   :  { %542 = dma.done.wait [#allocation4], 128  }
 0x353   :  { %543 = vsyncadd [#allocation4], 4294967168 }
 0x354   :  { %280 = vsyncpa [#allocation3], 1 }
 0x355   :  { %281 = vsyncpa [#allocation6], 1 }
 0x356   :  { %282 = vsyncpa [#allocation4], 1 }

</bundles_post_ra>
